<compile_context>
chip_gen: v7x
topology: tpu7x:2x2x1
jax: 0.10.0
libtpu: 0.0.40
codegen_flags: <defaults>
</compile_context>

<pallas_src>
import functools

import jax
import jax.numpy as jnp
from jax import lax
from jax.experimental import pallas as pl
from jax.experimental.pallas import tpu as pltpu


def _round_up(x, m):
    return ((x + m - 1) // m) * m


def _assign_attn_kernel(x_ref, wqkv_ref, wp_ref, bp_ref, o_ref, qkv_ref, av_ref, *,
                        num_heads, head_dim_p, assign_eps, compute_dtype, unroll):
    bt, n, c = x_ref.shape
    hp = head_dim_p
    hk = num_heads * hp          # lane width of each of q/k/v inside the fused slab

    # ---- fused QKV projection: one wide MXU matmul over every row of the tile.
    x2d = x_ref[...].reshape(bt * n, c).astype(compute_dtype)
    qkv = jnp.dot(x2d, wqkv_ref[...], preferred_element_type=jnp.float32)     # (bt*n, 3*hk)
    qkv_ref[...] = qkv.reshape(bt, n, 3 * hk).astype(compute_dtype)

    def batch_body(b, carry):
        # Static head loop: hp is a multiple of 128, so every lane slice below
        # starts on a 128-lane boundary -> free views, no masked relayouts.
        for h in range(num_heads):
            ho = h * hp
            qh = qkv_ref[b, :, ho:ho + hp]                                     # (n, hp)
            kh = qkv_ref[b, :, hk + ho:hk + ho + hp]                           # (n, hp)
            vh = qkv_ref[b, :, 2 * hk + ho:2 * hk + ho + hp]                   # (n, hp)

            # raw = q @ k^T   (the module's "* scale" is dropped: scale > 0 and
            # raw only feeds an argmax in the hard=True forward, so it is dead).
            raw = lax.dot_general(qh, kh, (((1,), (1,)), ((), ())),
                                  preferred_element_type=jnp.float32)          # (n, n)

            # hard_softmax over dim=-2 (the group/query axis == rows): one-hot of
            # the per-column argmax, first index on ties (matches torch.max).
            # argmax(softmax(x)) == argmax(x); the straight-through
            # "y_hard - y_soft + y_soft" is identity in the forward pass.
            col_max = jnp.max(raw, axis=0, keepdims=True)                      # (1, n)
            row_ids = lax.broadcasted_iota(jnp.int32, raw.shape, 0)
            first_idx = jnp.min(jnp.where(raw == col_max, row_ids, n),
                                axis=0, keepdims=True)                         # (1, n)
            attn = (row_ids == first_idx).astype(jnp.float32)                  # (n, n)

            # Assignment normalization over the key axis (dim=-1). Exact divide:
            # pl.reciprocal(approx=True) would exceed the 1e-5 tolerance.
            inv = 1.0 / (jnp.sum(attn, axis=-1, keepdims=True) + assign_eps)
            attn = (attn * inv).astype(compute_dtype)

            # TODO(synk): attn_drop / proj_drop are identity in eval mode (p=0.0).
            av = jnp.dot(attn, vh, preferred_element_type=jnp.float32)         # (n, hp)
            av_ref[b, :, ho:ho + hp] = av.astype(compute_dtype)
        return carry

    # fori_loop (not a Python unroll) bounds live ranges across the batch tile
    # and keeps the loop visible to the scheduler; state lives in VMEM refs.
    lax.fori_loop(0, bt, batch_body, None, unroll=unroll)

    # ---- single merged output projection over all rows and heads, + bias.
    # One (bt*n, H*hp) @ (H*hp, C) matmul replaces bt*H shallow per-head ones;
    # the zero-padded head rows of wp contribute exactly nothing.
    av_all = av_ref[...].reshape(bt * n, hk)
    out = jnp.dot(av_all, wp_ref[...], preferred_element_type=jnp.float32)     # (bt*n, c)
    out = out + bp_ref[...]                                                    # bias added once
    o_ref[...] = out.reshape(bt, n, c).astype(o_ref.dtype)


def _pick_batch_tile(batch, n_tokens, target_rows=512, min_grid_steps=2):
    """Largest divisor of `batch` keeping ~target_rows rows per grid step while
    leaving the grid with >= min_grid_steps steps (v7x has 2 TensorCores)."""
    best = 1
    for bt in range(1, batch + 1):
        if batch % bt:
            continue
        if bt * n_tokens > max(target_rows, n_tokens):
            continue
        if bt > 1 and batch // bt < min_grid_steps:
            continue
        best = bt
    return best


def assign_attention_forward(x, wq, wk, wv, wp, bp, *, num_heads, assign_eps=1.0,
                             qk_scale=None, hard=True, gumbel=False, sum_assign=False,
                             batch_tile=None, compute_dtype=jnp.float32,
                             target_rows=512):
    """x: (B, N, C) float32.  Linear weights in PyTorch (out, in) layout.

    compute_dtype: dtype of the MXU operands (accumulation always f32).
    jnp.bfloat16 is the fast path on v5e/v6e/v7x; near-tied argmax scores may
    flip vs. an all-f32 run (forward still a valid hard assignment)."""
    if (not hard) or gumbel or sum_assign:
        raise NotImplementedError(
            "kernel implements the default AssignAttention config: "
            "hard=True, gumbel=False (eval mode), sum_assign=False, qkv_bias=False")

    B, N, C = x.shape
    assert C % num_heads == 0
    head_dim = C // num_heads
    scale = qk_scale if qk_scale is not None else head_dim ** (-0.5)
    assert scale > 0  # with scale > 0 the scaling is dead compute in hard mode

    hd_p = _round_up(head_dim, 128)      # lane-align each head's slice
    hk = num_heads * hd_p
    pad = hd_p - head_dim

    bt = batch_tile if batch_tile is not None else _pick_batch_tile(B, N, target_rows)
    assert B % bt == 0

    # --- host-side weight packing (free): fuse QKV into one (C, 3*H*hd_p)
    # operand with each head zero-padded to hd_p columns, and the projection
    # into one (H*hd_p, C) operand with matching zero-padded rows.
    def pack_in(w):                                   # (C_out, C_in) -> (C, H*hd_p)
        cols = w.T.reshape(C, num_heads, head_dim)
        if pad:
            cols = jnp.pad(cols, ((0, 0), (0, 0), (0, pad)))
        return cols.reshape(C, hk)

    w_qkv = jnp.concatenate([pack_in(wq), pack_in(wk), pack_in(wv)],
                            axis=1).astype(compute_dtype)              # (C, 3*hk)
    wp_rows = wp.T.reshape(num_heads, head_dim, C)
    if pad:
        wp_rows = jnp.pad(wp_rows, ((0, 0), (0, pad), (0, 0)))
    wp_full = wp_rows.reshape(hk, C).astype(compute_dtype)             # (hk, C)
    bp2 = bp.reshape(1, C).astype(jnp.float32)

    kernel = functools.partial(
        _assign_attn_kernel, num_heads=num_heads, head_dim_p=hd_p,
        assign_eps=float(assign_eps), compute_dtype=compute_dtype,
        unroll=(True if bt <= 8 else 2))

    # Advisory cost hint for XLA scheduling around the custom call.
    itemsize = jnp.dtype(compute_dtype).itemsize
    flops = (2 * B * N * C * 3 * hk            # fused QKV
             + 4 * B * num_heads * N * N * hd_p  # q@k^T and attn@v
             + 2 * B * N * hk * C)             # merged output projection
    bytes_accessed = (2 * B * N * C * 4
                      + (C * 3 * hk + hk * C) * itemsize + C * 4)
    cost = pl.CostEstimate(flops=int(flops), transcendentals=0,
                           bytes_accessed=int(bytes_accessed))

    # Explicit scoped-VMEM budget (defaults: 16 MiB v5e / 32 MiB v6e,v7x).
    io_blk = bt * N * C * 4
    w_bytes = (C * 3 * hk + hk * C) * itemsize
    scr_bytes = bt * N * 4 * hk * itemsize     # qkv (3*hk) + av (hk) scratch
    vmem_est = 4 * io_blk + 2 * w_bytes + scr_bytes + C * 4
    vmem_limit = int(min(max(int(vmem_est * 1.5) + (1 << 20), 32 << 20), 64 << 20))

    return pl.pallas_call(
        kernel,
        out_shape=jax.ShapeDtypeStruct((B, N, C), jnp.float32),
        grid=(B // bt,),
        in_specs=[
            pl.BlockSpec((bt, N, C), lambda b: (b, 0, 0)),        # x batch tile
            pl.BlockSpec((C, 3 * hk), lambda b: (0, 0)),          # fused head-padded QKV weight
            pl.BlockSpec((hk, C), lambda b: (0, 0)),              # merged head-padded proj weight
            pl.BlockSpec((1, C), lambda b: (0, 0)),               # proj bias
        ],
        out_specs=pl.BlockSpec((bt, N, C), lambda b: (b, 0, 0)),
        scratch_shapes=[
            pltpu.VMEM((bt, N, 3 * hk), compute_dtype),           # staged qkv (lane-aligned heads)
            pltpu.VMEM((bt, N, hk), compute_dtype),               # per-head attn@v slab
        ],
        compiler_params=pltpu.CompilerParams(
            dimension_semantics=("parallel",),
            vmem_limit_bytes=vmem_limit),
        cost_estimate=cost,
    )(x, w_qkv, wp_full, bp2)


def assign_attention_reference(x, wq, wk, wv, wp, bp, *, num_heads, assign_eps=1.0,
                               qk_scale=None):
    """Pure-JAX reference mirroring the PyTorch forward (eval mode) literally."""
    B, N, C = x.shape
    hd = C // num_heads
    scale = qk_scale if qk_scale is not None else hd ** (-0.5)

    def split_heads(t):
        return t.reshape(B, N, num_heads, hd).transpose(0, 2, 1, 3)  # (B,H,N,hd)

    q = split_heads(x @ wq.T)
    k = split_heads(x @ wk.T)
    v = split_heads(x @ wv.T)

    raw = jnp.einsum('bhnc,bhsc->bhns', q, k) * scale                # (B,H,N,S)
    mx = jnp.max(raw, axis=-2, keepdims=True)
    e = jnp.exp(raw - mx)
    y_soft = e / jnp.sum(e, axis=-2, keepdims=True)

    row_ids = lax.broadcasted_iota(jnp.int32, raw.shape, 2)
    col_max = jnp.max(y_soft, axis=-2, keepdims=True)
    first_idx = jnp.min(jnp.where(y_soft == col_max, row_ids, N), axis=-2, keepdims=True)
    y_hard = (row_ids == first_idx).astype(jnp.float32)
    attn = y_hard - y_soft + y_soft                                  # straight-through fwd

    attn = attn / (jnp.sum(attn, axis=-1, keepdims=True) + assign_eps)
    out = jnp.einsum('bhns,bhsc->bhnc', attn, v)
    out = out.transpose(0, 2, 1, 3).reshape(B, N, C)
    return out @ wp.T + bp


if __name__ == "__main__":
    # Small shapes consistent with the module: dim C=32, num_heads=2, seq N=16.
    B, N, C = 2, 16, 32
    NUM_HEADS = 2

    key = jax.random.PRNGKey(0)
    kx, kq, kk, kv, kp, kb = jax.random.split(key, 6)

    x = jax.random.normal(kx, (B, N, C), dtype=jnp.float32)
    # Deterministic synthetic "Linear" parameters, PyTorch (out, in) layout.
    wq = 0.05 * jax.random.normal(kq, (C, C), dtype=jnp.float32)
    wk = 0.05 * jax.random.normal(kk, (C, C), dtype=jnp.float32)
    wv = 0.05 * jax.random.normal(kv, (C, C), dtype=jnp.float32)
    wp = 0.05 * jax.random.normal(kp, (C, C), dtype=jnp.float32)
    bp = 0.01 * jax.random.normal(kb, (C,), dtype=jnp.float32)

    # f32 path: exact-semantics check against the literal forward.
    out = assign_attention_forward(x, wq, wk, wv, wp, bp, num_heads=NUM_HEADS)
    out = jax.block_until_ready(out)
    ref = assign_attention_reference(x, wq, wk, wv, wp, bp, num_heads=NUM_HEADS)
    assert out.shape == (B, N, C)
    assert jnp.allclose(out, ref, atol=1e-5, rtol=1e-5), "mismatch vs JAX reference"

    # bf16 MXU-operand fast path (v5e/v6e/v7x throughput + VMEM win). Near-tied
    # argmax scores can legitimately flip vs. f32, so only smoke-check it.
    out_bf16 = assign_attention_forward(x, wq, wk, wv, wp, bp, num_heads=NUM_HEADS,
                                        compute_dtype=jnp.bfloat16)
    out_bf16 = jax.block_until_ready(out_bf16)
    assert out_bf16.shape == (B, N, C)
    assert bool(jnp.all(jnp.isfinite(out_bf16)))

    print("KERNEL_OK")
</pallas_src>

<mosaic_0001>
module attributes {stable_mosaic.version = 11 : i64} {
  func.func @_assign_attn_kernel(%arg0: i32, %arg1: memref<1x16x32xf32, #tpu.memory_space<vmem>>, %arg2: memref<32x768xf32, #tpu.memory_space<vmem>>, %arg3: memref<256x32xf32, #tpu.memory_space<vmem>>, %arg4: memref<1x32xf32, #tpu.memory_space<vmem>>, %arg5: memref<1x16x32xf32, #tpu.memory_space<vmem>>, %arg6: memref<1x16x768xf32, #tpu.memory_space<vmem>>, %arg7: memref<1x16x256xf32, #tpu.memory_space<vmem>>) attributes {dimension_semantics = [#tpu.dimension_semantics<parallel>], iteration_bounds = array<i64: 2>, scalar_prefetch = 0 : i64, scratch_operands = 2 : i64, tpu.core_type = #tpu.core_type<tc>, window_params = [{transform_indices = @transform_0, window_bounds = array<i64: 1, 16, 32>}, {pipeline_mode = #tpu.pipeline_mode<synchronous>, transform_indices = @transform_1, window_bounds = array<i64: 32, 768>}, {pipeline_mode = #tpu.pipeline_mode<synchronous>, transform_indices = @transform_2, window_bounds = array<i64: 256, 32>}, {pipeline_mode = #tpu.pipeline_mode<synchronous>, transform_indices = @transform_3, window_bounds = array<i64: 1, 32>}, {transform_indices = @transform_4, window_bounds = array<i64: 1, 16, 32>}]} {
    %c0 = arith.constant 0 : index
    %c0_0 = arith.constant 0 : index
    %c0_1 = arith.constant 0 : index
    %0 = vector.load %arg1[%c0, %c0_0, %c0_1] : memref<1x16x32xf32, #tpu.memory_space<vmem>>, vector<1x16x32xf32>
    %1 = vector.shape_cast %0 : vector<1x16x32xf32> to vector<16x32xf32>
    %c0_2 = arith.constant 0 : index
    %c0_3 = arith.constant 0 : index
    %2 = vector.load %arg2[%c0_2, %c0_3] : memref<32x768xf32, #tpu.memory_space<vmem>>, vector<32x768xf32>
    %cst = arith.constant dense<0.000000e+00> : vector<16x768xf32>
    %3 = tpu.matmul %1, %2, %cst {dimension_numbers = #tpu.dot_dimension_numbers<[1], [0], [0], [1], [0, 0, 1, 1], [], []>} : vector<16x32xf32>, vector<32x768xf32>, vector<16x768xf32> -> vector<16x768xf32>
    %4 = vector.shape_cast %3 : vector<16x768xf32> to vector<1x16x768xf32>
    %c0_4 = arith.constant 0 : index
    %c0_5 = arith.constant 0 : index
    %c0_6 = arith.constant 0 : index
    %5 = vector.load %arg6[%c0_4, %c0_5, %c0_6] : memref<1x16x768xf32, #tpu.memory_space<vmem>>, vector<1x16x768xf32>
    tpu.vector_store %arg6[%c0_4, %c0_5, %c0_6], %4 {strides = array<i32>} : memref<1x16x768xf32, #tpu.memory_space<vmem>>, vector<1x16x768xf32>,
    %c0_i32 = arith.constant 0 : i32
    %6 = arith.index_cast %c0_i32 : i32 to index
    %c0_7 = arith.constant 0 : index
    %c0_8 = arith.constant 0 : index
    %7 = vector.load %arg6[%6, %c0_7, %c0_8] : memref<1x16x768xf32, #tpu.memory_space<vmem>>, vector<1x16x128xf32>
    %8 = vector.shape_cast %7 : vector<1x16x128xf32> to vector<16x128xf32>
    %9 = arith.index_cast %c0_i32 : i32 to index
    %c0_9 = arith.constant 0 : index
    %c256 = arith.constant 256 : index
    %10 = vector.load %arg6[%9, %c0_9, %c256] : memref<1x16x768xf32, #tpu.memory_space<vmem>>, vector<1x16x128xf32>
    %11 = vector.shape_cast %10 : vector<1x16x128xf32> to vector<16x128xf32>
    %12 = arith.index_cast %c0_i32 : i32 to index
    %c0_10 = arith.constant 0 : index
    %c512 = arith.constant 512 : index
    %13 = vector.load %arg6[%12, %c0_10, %c512] : memref<1x16x768xf32, #tpu.memory_space<vmem>>, vector<1x16x128xf32>
    %14 = vector.shape_cast %13 : vector<1x16x128xf32> to vector<16x128xf32>
    %cst_11 = arith.constant dense<0.000000e+00> : vector<16x16xf32>
    %15 = tpu.matmul %8, %11, %cst_11 {dimension_numbers = #tpu.dot_dimension_numbers<[1], [1], [0], [0], [0, 0, 1, 0], [], []>} : vector<16x128xf32>, vector<16x128xf32>, vector<16x16xf32> -> vector<16x16xf32>
    %cst_12 = arith.constant dense<0xFF800000> : vector<16xf32>
    %16 = vector.multi_reduction <maximumf>, %15, %cst_12 [0] : vector<16x16xf32> to vector<16xf32>
    %17 = vector.shape_cast %16 : vector<16xf32> to vector<1x16xf32>
    %18 = tpu.iota {dimensions = array<i32: 0>} : vector<16x16xi32>
    %19 = vector.broadcast %17 : vector<1x16xf32> to vector<16x16xf32>
    %20 = arith.cmpf oeq, %15, %19 : vector<16x16xf32>
    %c16_i32 = arith.constant 16 : i32
    %21 = vector.broadcast %c16_i32 : i32 to vector<16x16xi32>
    %22 = arith.select %20, %18, %21 : vector<16x16xi1>, vector<16x16xi32>
    %cst_13 = arith.constant dense<2147483647> : vector<16xi32>
    %23 = vector.multi_reduction <minsi>, %22, %cst_13 [0] : vector<16x16xi32> to vector<16xi32>
    %24 = vector.shape_cast %23 : vector<16xi32> to vector<1x16xi32>
    %25 = vector.broadcast %24 : vector<1x16xi32> to vector<16x16xi32>
    %26 = arith.cmpi eq, %18, %25 : vector<16x16xi32>
    %27 = arith.extui %26 : vector<16x16xi1> to vector<16x16xi32>
    %28 = arith.sitofp %27 : vector<16x16xi32> to vector<16x16xf32>
    %cst_14 = arith.constant dense<0.000000e+00> : vector<16xf32>
    %29 = vector.multi_reduction <add>, %28, %cst_14 [1] : vector<16x16xf32> to vector<16xf32>
    %30 = vector.shape_cast %29 : vector<16xf32> to vector<16x1xf32>
    %cst_15 = arith.constant 1.000000e+00 : f32
    %31 = vector.broadcast %cst_15 : f32 to vector<16x1xf32>
    %32 = arith.addf %30, %31 : vector<16x1xf32>
    %cst_16 = arith.constant 1.000000e+00 : f32
    %33 = vector.broadcast %cst_16 : f32 to vector<16x1xf32>
    %34 = arith.divf %33, %32 : vector<16x1xf32>
    %35 = vector.broadcast %34 : vector<16x1xf32> to vector<16x16xf32>
    %36 = arith.mulf %28, %35 : vector<16x16xf32>
    %cst_17 = arith.constant dense<0.000000e+00> : vector<16x128xf32>
    %37 = tpu.matmul %36, %14, %cst_17 {dimension_numbers = #tpu.dot_dimension_numbers<[1], [0], [0], [1], [0, 0, 1, 1], [], []>} : vector<16x16xf32>, vector<16x128xf32>, vector<16x128xf32> -> vector<16x128xf32>
    %38 = arith.index_cast %c0_i32 : i32 to index
    %c0_18 = arith.constant 0 : index
    %c0_19 = arith.constant 0 : index
    %39 = vector.load %arg7[%38, %c0_18, %c0_19] : memref<1x16x256xf32, #tpu.memory_space<vmem>>, vector<1x16x128xf32>
    %40 = vector.shape_cast %39 : vector<1x16x128xf32> to vector<16x128xf32>
    %41 = vector.shape_cast %37 : vector<16x128xf32> to vector<1x16x128xf32>
    tpu.vector_store %arg7[%38, %c0_18, %c0_19], %41 {strides = array<i32>} : memref<1x16x256xf32, #tpu.memory_space<vmem>>, vector<1x16x128xf32>,
    %42 = arith.index_cast %c0_i32 : i32 to index
    %c0_20 = arith.constant 0 : index
    %c128 = arith.constant 128 : index
    %43 = vector.load %arg6[%42, %c0_20, %c128] : memref<1x16x768xf32, #tpu.memory_space<vmem>>, vector<1x16x128xf32>
    %44 = vector.shape_cast %43 : vector<1x16x128xf32> to vector<16x128xf32>
    %45 = arith.index_cast %c0_i32 : i32 to index
    %c0_21 = arith.constant 0 : index
    %c384 = arith.constant 384 : index
    %46 = vector.load %arg6[%45, %c0_21, %c384] : memref<1x16x768xf32, #tpu.memory_space<vmem>>, vector<1x16x128xf32>
    %47 = vector.shape_cast %46 : vector<1x16x128xf32> to vector<16x128xf32>
    %48 = arith.index_cast %c0_i32 : i32 to index
    %c0_22 = arith.constant 0 : index
    %c640 = arith.constant 640 : index
    %49 = vector.load %arg6[%48, %c0_22, %c640] : memref<1x16x768xf32, #tpu.memory_space<vmem>>, vector<1x16x128xf32>
    %50 = vector.shape_cast %49 : vector<1x16x128xf32> to vector<16x128xf32>
    %cst_23 = arith.constant dense<0.000000e+00> : vector<16x16xf32>
    %51 = tpu.matmul %44, %47, %cst_23 {dimension_numbers = #tpu.dot_dimension_numbers<[1], [1], [0], [0], [0, 0, 1, 0], [], []>} : vector<16x128xf32>, vector<16x128xf32>, vector<16x16xf32> -> vector<16x16xf32>
    %cst_24 = arith.constant dense<0xFF800000> : vector<16xf32>
    %52 = vector.multi_reduction <maximumf>, %51, %cst_24 [0] : vector<16x16xf32> to vector<16xf32>
    %53 = vector.shape_cast %52 : vector<16xf32> to vector<1x16xf32>
    %54 = tpu.iota {dimensions = array<i32: 0>} : vector<16x16xi32>
    %55 = vector.broadcast %53 : vector<1x16xf32> to vector<16x16xf32>
    %56 = arith.cmpf oeq, %51, %55 : vector<16x16xf32>
    %c16_i32_25 = arith.constant 16 : i32
    %57 = vector.broadcast %c16_i32_25 : i32 to vector<16x16xi32>
    %58 = arith.select %56, %54, %57 : vector<16x16xi1>, vector<16x16xi32>
    %cst_26 = arith.constant dense<2147483647> : vector<16xi32>
    %59 = vector.multi_reduction <minsi>, %58, %cst_26 [0] : vector<16x16xi32> to vector<16xi32>
    %60 = vector.shape_cast %59 : vector<16xi32> to vector<1x16xi32>
    %61 = vector.broadcast %60 : vector<1x16xi32> to vector<16x16xi32>
    %62 = arith.cmpi eq, %54, %61 : vector<16x16xi32>
    %63 = arith.extui %62 : vector<16x16xi1> to vector<16x16xi32>
    %64 = arith.sitofp %63 : vector<16x16xi32> to vector<16x16xf32>
    %cst_27 = arith.constant dense<0.000000e+00> : vector<16xf32>
    %65 = vector.multi_reduction <add>, %64, %cst_27 [1] : vector<16x16xf32> to vector<16xf32>
    %66 = vector.shape_cast %65 : vector<16xf32> to vector<16x1xf32>
    %cst_28 = arith.constant 1.000000e+00 : f32
    %67 = vector.broadcast %cst_28 : f32 to vector<16x1xf32>
    %68 = arith.addf %66, %67 : vector<16x1xf32>
    %cst_29 = arith.constant 1.000000e+00 : f32
    %69 = vector.broadcast %cst_29 : f32 to vector<16x1xf32>
    %70 = arith.divf %69, %68 : vector<16x1xf32>
    %71 = vector.broadcast %70 : vector<16x1xf32> to vector<16x16xf32>
    %72 = arith.mulf %64, %71 : vector<16x16xf32>
    %cst_30 = arith.constant dense<0.000000e+00> : vector<16x128xf32>
    %73 = tpu.matmul %72, %50, %cst_30 {dimension_numbers = #tpu.dot_dimension_numbers<[1], [0], [0], [1], [0, 0, 1, 1], [], []>} : vector<16x16xf32>, vector<16x128xf32>, vector<16x128xf32> -> vector<16x128xf32>
    %74 = arith.index_cast %c0_i32 : i32 to index
    %c0_31 = arith.constant 0 : index
    %c128_32 = arith.constant 128 : index
    %75 = vector.load %arg7[%74, %c0_31, %c128_32] : memref<1x16x256xf32, #tpu.memory_space<vmem>>, vector<1x16x128xf32>
    %76 = vector.shape_cast %75 : vector<1x16x128xf32> to vector<16x128xf32>
    %77 = vector.shape_cast %73 : vector<16x128xf32> to vector<1x16x128xf32>
    tpu.vector_store %arg7[%74, %c0_31, %c128_32], %77 {strides = array<i32>} : memref<1x16x256xf32, #tpu.memory_space<vmem>>, vector<1x16x128xf32>,
    %c1_i32 = arith.constant 1 : i32
    %c0_33 = arith.constant 0 : index
    %c0_34 = arith.constant 0 : index
    %c0_35 = arith.constant 0 : index
    %78 = vector.load %arg7[%c0_33, %c0_34, %c0_35] : memref<1x16x256xf32, #tpu.memory_space<vmem>>, vector<1x16x256xf32>
    %79 = vector.shape_cast %78 : vector<1x16x256xf32> to vector<16x256xf32>
    %c0_36 = arith.constant 0 : index
    %c0_37 = arith.constant 0 : index
    %80 = vector.load %arg3[%c0_36, %c0_37] : memref<256x32xf32, #tpu.memory_space<vmem>>, vector<256x32xf32>
    %cst_38 = arith.constant dense<0.000000e+00> : vector<16x32xf32>
    %81 = tpu.matmul %79, %80, %cst_38 {dimension_numbers = #tpu.dot_dimension_numbers<[1], [0], [0], [1], [0, 0, 1, 1], [], []>} : vector<16x256xf32>, vector<256x32xf32>, vector<16x32xf32> -> vector<16x32xf32>
    %c0_39 = arith.constant 0 : index
    %c0_40 = arith.constant 0 : index
    %82 = vector.load %arg4[%c0_39, %c0_40] : memref<1x32xf32, #tpu.memory_space<vmem>>, vector<1x32xf32>
    %83 = vector.broadcast %82 : vector<1x32xf32> to vector<16x32xf32>
    %84 = arith.addf %81, %83 : vector<16x32xf32>
    %85 = vector.shape_cast %84 : vector<16x32xf32> to vector<1x16x32xf32>
    %c0_41 = arith.constant 0 : index
    %c0_42 = arith.constant 0 : index
    %c0_43 = arith.constant 0 : index
    %86 = vector.load %arg5[%c0_41, %c0_42, %c0_43] : memref<1x16x32xf32, #tpu.memory_space<vmem>>, vector<1x16x32xf32>
    tpu.vector_store %arg5[%c0_41, %c0_42, %c0_43], %85 {strides = array<i32>} : memref<1x16x32xf32, #tpu.memory_space<vmem>>, vector<1x16x32xf32>,
    return
  }
  func.func @transform_0(%arg0: i32) -> (i32, i32, i32) {
    %c0_i32 = arith.constant 0 : i32
    %c0_i32_0 = arith.constant 0 : i32
    %c0_i32_1 = arith.constant 0 : i32
    return %arg0, %c0_i32, %c0_i32_0 : i32, i32, i32
  }
  func.func @transform_1(%arg0: i32) -> (i32, i32) {
    %c0_i32 = arith.constant 0 : i32
    %c0_i32_0 = arith.constant 0 : i32
    %c0_i32_1 = arith.constant 0 : i32
    return %c0_i32, %c0_i32_0 : i32, i32
  }
  func.func @transform_2(%arg0: i32) -> (i32, i32) {
    %c0_i32 = arith.constant 0 : i32
    %c0_i32_0 = arith.constant 0 : i32
    %c0_i32_1 = arith.constant 0 : i32
    return %c0_i32, %c0_i32_0 : i32, i32
  }
  func.func @transform_3(%arg0: i32) -> (i32, i32) {
    %c0_i32 = arith.constant 0 : i32
    %c0_i32_0 = arith.constant 0 : i32
    %c0_i32_1 = arith.constant 0 : i32
    return %c0_i32, %c0_i32_0 : i32, i32
  }
  func.func @transform_4(%arg0: i32) -> (i32, i32, i32) {
    %c0_i32 = arith.constant 0 : i32
    %c0_i32_0 = arith.constant 0 : i32
    %c0_i32_1 = arith.constant 0 : i32
    return %arg0, %c0_i32, %c0_i32_0 : i32, i32, i32
  }
}

</mosaic_0001>

<bundles_post_ra>
// kernel: tpu_custom_call.1
= control target key start
LH: loop header
LB: loop body
LE: loop exit
PB: predicated region body
PF: predicated region fallthrough
CT: control target
= control target key end

     0   :  { %9 = vsyncpa [#allocation5], 0  ;;  %s1746_s0 = inlined_call_operand.vmem [shape: f32[2,16,32], index: 0, kind: input, shape index: {}]   ;;  %s1747_s1 = inlined_call_operand.vmem [shape: f32[32,768], index: 1, kind: input, shape index: {}]   ;;  %s1748_s2 = inlined_call_operand.vmem [shape: f32[256,32], index: 2, kind: input, shape index: {}]   ;;  %s1749_s3 = inlined_call_operand.vmem [shape: f32[1,32], index: 3, kind: input, shape index: {}]   ;;  %s1750_s4 = inlined_call_operand.hbm [shape: f32[2,16,32], index: 4, kind: output, shape index: {}]  }
   0x1   :  { %11 = vsyncpa [#allocation5 + $0x1], 0  ;;  %s1418_s15 = smov 0   ;;  %s1420_s16 = smov 0  }
   0x2   :  { %s1422_s17 = smov 0   ;;  %s1424_s18 = smov 0  }
   0x3 LB: > { %s1439_s19 = sadd.s32 4294967295, %s1387_s18   ;;  %s1092_s20 = sadd.s32 4294967294, %s1387_s18   ;;  %s1387_s18 = sphi %s1424_s18, %s1756_s18   ;;  %s1383_s17 = sphi %s1422_s17, %s1755_s17   ;;  %s1379_s16 = sphi %s1420_s16, %s1754_s16   ;;  %s1375_s15 = sphi %s1418_s15, %s1753_s15  }
   0x4   : > { %s1443_s21 = sadd.s32 1, %s1387_s18   ;;  %s113_s22 = sadd.s32 1, %s1383_s17 }
   0x5   : > { %s110_s23 = ssub.s32 %s1387_s18, %s1443_s21  ;;  %p123_p0 = scmp.ne.s32.totalorder %s1383_s17, %s1379_s16 }
   0x6   : > { %p111_p1 = scmp.eq.s32.totalorder %s110_s23, 0  ;;  %p124_p2 = scmp.eq.s32.totalorder %s1439_s19, 1 }
   0x7   : > { %p129_p3 = scmp.ne.s32.totalorder %s1379_s16, %s1375_s15  ;;  %p130_p4 = scmp.eq.s32.totalorder %s1092_s20, 1 }
   0x8   : > { %s1454_s24 = scalar_select %p111_p1, %s1383_s17, %s113_s22  }
   0x9   : > { %p1456_p5 = por %p124_p2, %p123_p0  ;;  %p1460_p6 = por %p130_p4, %p129_p3 }
   0xa   : > { %p1095_p7 = scmp.ge.s32.totalorder %s1387_s18, 1  ;;  %p165_p8 = scmp.lt.s32.totalorder %s1387_s18, 3 }
   0xc   : > { %p166_p9 = pnand %p1095_p7, %p165_p8 }
   0xd   : > { %v199_v0 = vld [vmem:[%s1747_s1 + $0x8] sm:$0xff] (!%p166_p9)  ;;  %v205_v1 = vld [vmem:[%s1747_s1 + $0x38] sm:$0xff] (!%p166_p9)  ;;  %v198_v2 = vld [vmem:[%s1747_s1] sm:$0xff] (!%p166_p9)  ;;  %p191_p10 = scmp.lt.s32.totalorder (!%p166_p9), %s1439_s19, 1  ;;  %v1389_v7 = vmov (!%p166_p9), 0.0   ;;  %vm222_vm0 = vcmask (!%p166_p9), 261120  }
   0xe   : > { %169 = sbr.rel (%p166_p9) target bundleno = 1123 (0x463), region = 36  ;;  %v1203_v3 = vpack.c.bf16 (!%p166_p9), %v205_v1, %v199_v0  ;;  %v204_v4 = vld [vmem:[%s1747_s1 + $0x30] sm:$0xff] (!%p166_p9)  ;;  %v211_v5 = vld [vmem:[%s1747_s1 + $0x68] sm:$0xff] (!%p166_p9)  ;;  %v217_v6 = vld [vmem:[%s1747_s1 + $0x98] sm:$0xff] (!%p166_p9)  ;;  %293 = vmatprep.mubr.f32.mxu1 (!%p166_p9), %v1389_v7  ;;  %vm553_vm1 = vcmask (!%p166_p9), 130048   ;;  %s1390_s11 = smov (!%p166_p9), [#allocation4]  }
   0xf   : > { %v1205_v8 = vpack.c.bf16 (!%p166_p9), %v204_v4, %v198_v2  ;;  %v1207_v9 = vpack.c.bf16 (!%p166_p9), %v217_v6, %v211_v5  ;;  %v210_v10 = vld [vmem:[%s1747_s1 + $0x60] sm:$0xff] (!%p166_p9)  ;;  %v216_v11 = vld [vmem:[%s1747_s1 + $0x90] sm:$0xff] (!%p166_p9)  ;;  %v201_v12 = vld [vmem:[%s1747_s1 + $0x18] sm:$0xff] (!%p166_p9)  ;;  %v563_v2 = vlaneseq (!%p166_p9)  ;;  %s1329_s12 = sshll.u32 (!%p166_p9), %s1390_s11, 4  ;;  %s1330_s12 = int_to_ptr.vmem [resolvable:$false] %s1329_s12 }
  0x10   : > { %1204 = vmatprep.subr.bf16.mxu1 (!%p166_p9), %v1203_v3  ;;  %v207_v13 = vld [vmem:[%s1747_s1 + $0x48] sm:$0xff] (!%p166_p9)  ;;  %v1209_v14 = vpack.c.bf16 (!%p166_p9), %v216_v11, %v210_v10  ;;  %v200_v16 = vld [vmem:[%s1747_s1 + $0x10] sm:$0xff] (!%p166_p9)  ;;  %v206_v17 = vld [vmem:[%s1747_s1 + $0x40] sm:$0xff] (!%p166_p9)  ;;  %s1331_s13 = scalar_lea.vmem (!%p166_p9), %s1330_s12, 512 }
  0x11   : > { %1206 = vmatpush1.bf16.msra.mxu1 (!%p166_p9), %v1205_v8  ;;  %v1211_v15 = vpack.c.bf16 (!%p166_p9), %v207_v13, %v201_v12  ;;  %v213_v18 = vld [vmem:[%s1747_s1 + $0x78] sm:$0xff] (!%p166_p9)  ;;  %v219_v19 = vld [vmem:[%s1747_s1 + $0xa8] sm:$0xff] (!%p166_p9)  ;;  %v1213_v21 = vpack.c.bf16 (!%p166_p9), %v206_v17, %v200_v16  ;;  %v212_v23 = vld [vmem:[%s1747_s1 + $0x70] sm:$0xff] (!%p166_p9)  ;;  %v564_v8 = vshrl.u32 (!%p166_p9), %v563_v2, 7 }
  0x12   : > { %1208 = vmatprep.subr.bf16.mxu1 (!%p166_p9), %v1207_v9  ;;  %v1215_v22 = vpack.c.bf16 (!%p166_p9), %v219_v19, %v213_v18  ;;  %v218_v24 = vld [vmem:[%s1747_s1 + $0xa0] sm:$0xff] (!%p166_p9)  ;;  %v203_v25 = vld [vmem:[%s1747_s1 + $0x28] sm:$0xff] (!%p166_p9)  ;;  %v209_v26 = vld [vmem:[%s1747_s1 + $0x58] sm:$0xff] (!%p166_p9) }
  0x13   : > { %v1217_v28 = vpack.c.bf16 (!%p166_p9), %v218_v24, %v212_v23  ;;  %v1219_v29 = vpack.c.bf16 (!%p166_p9), %v209_v26, %v203_v25  ;;  %v202_v30 = vld [vmem:[%s1747_s1 + $0x20] sm:$0xff] (!%p166_p9)  ;;  %v208_v31 = vld [vmem:[%s1747_s1 + $0x50] sm:$0xff] (!%p166_p9)  ;;  %v215_v32 = vld [vmem:[%s1747_s1 + $0x88] sm:$0xff] (!%p166_p9)  ;;  %v565_v13 = vadd.s32 (!%p166_p9), 8, %v564_v8 }
  0x14   : > { %v221_v33 = vld [vmem:[%s1747_s1 + $0xb8] sm:$0xff] (!%p166_p9)  ;;  %v1221_v34 = vpack.c.bf16 (!%p166_p9), %v208_v31, %v202_v30  ;;  %v214_v36 = vld [vmem:[%s1747_s1 + $0x80] sm:$0xff] (!%p166_p9)  ;;  %v220_v37 = vld [vmem:[%s1747_s1 + $0xb0] sm:$0xff] (!%p166_p9) }
  0x15   : > { %s192_s23 = scalar_select %p191_p10, %s1439_s19, 1  ;;  %1210 = vmatpush1.bf16.msra.mxu1 %v1209_v14  ;;  %v1223_v35 = vpack.c.bf16 %v221_v33, %v215_v32  ;;  %v1225_v38 = vpack.c.bf16 %v220_v37, %v214_v36 }
  0x16   : > { %1212 = vmatprep.subr.bf16.mxu1 %v1211_v15 }
  0x17   : > { %s1119_s5 = sshll.u32 %s192_s23, 4 }
  0x18   : > { %s195_s8 = scalar_lea.vmem %s1746_s0, %s1119_s5  ;;  %s1120_s5 = sshll.u32 %s1439_s19, 8 }
  0x19   : > { %v196_v20 = vld [vmem:[%s195_s8] sm:$0xff]  ;;  %v197_v27 = vld [vmem:[%s195_s8 + $0x8] sm:$0xff]  ;;  %s188_s8 = sand.u32 1, %s1379_s16   ;;  %s1700_s9 = scalar_lea.hbm %s1750_s4, %s1120_s5 }
  0x1a   : > { %1099 = vmatmul.mubr.msk.f32.vlgmr.msra.gmra.mrb[0].mxu1 %vm222_vm0, %v196_v20  ;;  %s1096_s23 = sshll.u32 %s188_s8, 4  ;;  %s1705_s10 = scalar_lea.sflag [#allocation5], %s188_s8 }
  0x1b   : > { %1214 = vmatpush1.bf16.msra.mxu1 %v1213_v21  ;;  %299 = vmatprep.mubr.f32.mxu1 %v1389_v7  ;;  %s190_s29 = scalar_lea.vmem [#allocation4], %s1096_s23 }
  0x1c   : > { %1216 = vmatprep.subr.bf16.mxu1 %v1215_v22  ;;  %s1030_s30 = sshll.u32 %s190_s29, 4  ;;  %s1702_s30 = int_to_ptr.vmem [resolvable:$true] %s1030_s30 }
  0x1d   : > { %s1325_s19 = scalar_lea.vmem %s1702_s30, 256  ;;  %p1332_p0 = scmp.lt.s32.totalorder %s1702_s30, %s1330_s12 }
  0x1e   : > { %1100 = vmatmul.mubr.msk.f32.gmra.mrb[2].mxu1 %vm222_vm0, %v197_v27  ;;  %p1326_p11 = scmp.ne.s32.totalorder %s1702_s30, %s1325_s19  ;;  %p1333_p1 = scmp.lt.s32.totalorder %s1331_s13, %s1325_s19 }
  0x1f   : > { %1218 = vmatpush1.bf16.msra.mxu1 %v1217_v28  ;;  %370 = vmatprep.mubr.f32.mxu1 %v1389_v7 }
  0x20   : > { %1220 = vmatprep.subr.bf16.mxu1 %v1219_v29  ;;  %p1327_p12 = pnand %p1326_p11, %p1456_p5  ;;  %p1334_p2 = por %p1333_p1, %p1332_p0 }
  0x22   : > { %1101 = vmatmul.mubr.msk.f32.vlgmr.msra.gmra.mrb[4].mxu1 %vm222_vm0, %v196_v20  ;;  %p1328_p13 = pneg %p1327_p12 }
  0x23   : > { %376 = vmatprep.mubr.f32.mxu1 %v1389_v7  ;;  %1222 = vmatpush1.bf16.msra.mxu1 %v1221_v34 }
  0x24   : > { %1224 = vmatprep.subr.bf16.mxu1 %v1223_v35  ;;  %p1335_p3 = pnand %p1334_p2, %p1328_p13 }
  0x26   : > { %1102 = vmatmul.mubr.msk.f32.gmra.mrb[6].mxu1 %vm222_vm0, %v197_v27 }
  0x27   : > { %1226 = vmatpush1.bf16.msra.mxu1 %v1225_v38  ;;  %447 = vmatprep.mubr.f32.mxu1 %v1389_v7 }
  0x2a   : > { %1103 = vmatmul.mubr.msk.f32.vlgmr.msra.gmra.mrb[8].mxu1 %vm222_vm0, %v196_v20 }
  0x2b   : > { %453 = vmatprep.mubr.f32.mxu1 %v1389_v7 }
  0x2e   : > { %1104 = vmatmul.mubr.msk.f32.gmra.mrb[10].mxu1 %vm222_vm0, %v197_v27 }
  0xed   : > { %v295_v39 = vpop.f32.mrb[0].mxu1 }
  0xee   : > { %v297_v40 = vpop.f32.mrb[1].mxu1  ;;  %1179 = vmatprep.mubr.f32.mxu1 %v295_v39 }
  0xef   : > { %1193 = vmatprep.mubr.f32.mxu0 %v297_v40 }
  0xf1   : > { %v301_v41 = vpop.f32.mrb[2].mxu1 }
  0xf2   : > { %v303_v42 = vpop.f32.mrb[3].mxu1 }
  0xf5   : > { %v372_v43 = vpop.f32.mrb[4].mxu1 }
  0xf6   : > { %v374_v44 = vpop.f32.mrb[5].mxu1 }
  0xf9   : > { %v378_v45 = vpop.f32.mrb[6].mxu1 }
  0xfa   : > { %v1227_v46 = vpack.c.bf16 %v378_v45, %v372_v43  ;;  %v380_v47 = vpop.f32.mrb[7].mxu1 }
  0xfb   : > { %v1235_v48 = vpack.c.bf16 %v380_v47, %v374_v44  ;;  %v916_v47 = vld [vmem:[%s1748_s2 + $0x80] sm:$0xff] }
  0xfc   : > { %1228 = vmatprep.subr.bf16.mxu1 %v1227_v46 }
  0xfd   : > { %1230 = vmatpush3.bf16.xpose.msra.mxu1 %v1227_v46  ;;  %1236 = vmatprep.subr.bf16.mxu0 %v1235_v48  ;;  %v449_v49 = vpop.f32.mrb[8].mxu1 }
  0xfe   : > { %1238 = vmatpush3.bf16.xpose.msra.mxu0 %v1235_v48  ;;  %v451_v50 = vpop.f32.mrb[9].mxu1  ;;  %v917_v48 = vld [vmem:[%s1748_s2 + $0x88] sm:$0xff] }
 0x101   : > { %v455_v51 = vpop.f32.mrb[10].mxu1 }
 0x102   : > { %v1231_v52 = vpack.c.bf16 %v455_v51, %v449_v49  ;;  %v457_v53 = vpop.f32.mrb[11].mxu1  ;;  %v1243_v49 = vpack.c.bf16 %v917_v48, %v916_v47  ;;  %v918_v51 = vld [vmem:[%s1748_s2 + $0x90] sm:$0xff] }
 0x103   : > { %v1555_v54 = vpack.c.bf16 %v457_v53, %v451_v50  ;;  %v901_v50 = vld [vmem:[%s1748_s2 + $0x8] sm:$0xff] }
 0x104   : > { %1180 = vmatmul.mubr.f32.vlgmr.msra.gmra.mrb[12].mxu1 %v301_v41  ;;  %1232 = vmatprep.subr.bf16.mxu1 %v1231_v52 }
 0x105   : > { %1194 = vmatmul.mubr.f32.vlgmr.msra.gmra.mrb[0].mxu0 %v303_v42  ;;  %1234 = vmatpush3.bf16.msra.mxu1 %v1231_v52  ;;  %v919_v52 = vld [vmem:[%s1748_s2 + $0x98] sm:$0xff] }
 0x106   : > { %1240 = vmatprep.subr.bf16.mxu1 %v1555_v54  ;;  %1244 = vmatprep.subr.bf16.mxu0 %v1243_v49 }
 0x1d7   : > { %v1181_v55 = vpop.f32.mrb[12].mxu1 }
 0x1d8   : > { %v555_v56 = vsel %vm553_vm1, %v1181_v55, -inf  ;;  %v544_v57 = vpop.f32.mrb[13].mxu1  ;;  %v1195_v58 = vpop.f32.mrb[0].mxu0 }
 0x1d9   : > { %v554_v59 = vsel %vm553_vm1, %v544_v57, -inf  ;;  %v768_v60 = vsel %vm553_vm1, %v1195_v58, -inf  ;;  %v758_v61 = vpop.f32.mrb[1].mxu0 }
 0x1da   : > { %v556_v62 = vmax.f32 %v554_v59, %v555_v56  ;;  %v767_v63 = vsel %vm553_vm1, %v758_v61, -inf  ;;  %v902_v56 = vld [vmem:[%s1748_s2 + $0x10] sm:$0xff]  ;;  %v921_v59 = vld [vmem:[%s1748_s2 + $0xa8] sm:$0xff] }
 0x1db   : > { %v769_v0 = vmax.f32 %v767_v63, %v768_v60  ;;  %v905_v63 = vld [vmem:[%s1748_s2 + $0x28] sm:$0xff] }
 0x1dc   : > { %v557_v1 = vrot.slane %v556_v62, 4 }
 0x1dd   : > { %v770_v3 = vrot.slane %v769_v0, 4 }
 0x1de   : > { %v558_v4 = vmax.f32 %v556_v62, %v557_v1  ;;  %v904_v62 = vld [vmem:[%s1748_s2 + $0x20] sm:$0xff]  ;;  %v923_v1 = vld [vmem:[%s1748_s2 + $0xb8] sm:$0xff] }
 0x1df   : > { %v771_v5 = vmax.f32 %v769_v0, %v770_v3  ;;  %v922_v0 = vld [vmem:[%s1748_s2 + $0xb0] sm:$0xff]  ;;  %v1253_v2 = vpack.c.bf16 %v905_v63, %v904_v62 }
 0x1e0   : > { %v559_v6 = vrot.slane %v558_v4, 2  ;;  %v1255_v3 = vpack.c.bf16 %v923_v1, %v922_v0 }
 0x1e1   : > { %v772_v9 = vrot.slane %v771_v5, 2 }
 0x1e2   : > { %v560_v10 = vmax.f32 %v558_v4, %v559_v6  ;;  %v906_v4 = vld [vmem:[%s1748_s2 + $0x30] sm:$0xff]  ;;  %v924_v6 = vld [vmem:[%s1748_s2 + $0xc0] sm:$0xff] }
 0x1e3   : > { %v773_v11 = vmax.f32 %v771_v5, %v772_v9  ;;  %v907_v5 = vld [vmem:[%s1748_s2 + $0x38] sm:$0xff] }
 0x1e4   : > { %v561_v12 = vrot.slane %v560_v10, 1  ;;  %v1257_v9 = vpack.c.bf16 %v907_v5, %v906_v4 }
 0x1e5   : > { %v774_v14 = vrot.slane %v773_v11, 1 }
 0x1e6   : > { %v562_v15 = vmax.f32 %v560_v10, %v561_v12  ;;  %v909_v12 = vld [vmem:[%s1748_s2 + $0x48] sm:$0xff] }
 0x1e7   : > { %v775_v16 = vmax.f32 %v773_v11, %v774_v14  ;;  %v908_v11 = vld [vmem:[%s1748_s2 + $0x40] sm:$0xff]  ;;  %v927_v14 = vld [vmem:[%s1748_s2 + $0xd8] sm:$0xff] }
 0x1e8   : > { %vm566_vm2 = vcmp.eq.f32.partialorder %v544_v57, %v562_v15  ;;  %vm567_vm3 = vcmp.eq.f32.partialorder %v1181_v55, %v562_v15  ;;  %v1247_v55 = vpack.c.bf16 %v919_v52, %v918_v51  ;;  %v903_v57 = vld [vmem:[%s1748_s2 + $0x18] sm:$0xff]  ;;  %v1261_v15 = vpack.c.bf16 %v909_v12, %v908_v11  ;;  %v1113_v51 = vld [vmem:[%s1749_s3] ss:$0 sm:$0xff] }
 0x1e9   : > { %v568_v17 = vsel %vm566_vm2, %v564_v8, 16  ;;  %v569_v18 = vsel %vm567_vm3, %v565_v13, 16  ;;  %vm776_vm4 = vcmp.eq.f32.partialorder %v758_v61, %v775_v16  ;;  %vm777_vm5 = vcmp.eq.f32.partialorder %v1195_v58, %v775_v16  ;;  %v920_v58 = vld [vmem:[%s1748_s2 + $0xa0] sm:$0xff] }
 0x1ea   : > { %v570_v19 = vsel %vm553_vm1, %v568_v17, 2147483647  ;;  %v571_v20 = vsel %vm553_vm1, %v569_v18, 2147483647  ;;  %v778_v21 = vsel %vm776_vm4, %v564_v8, 16  ;;  %v779_v22 = vsel %vm777_vm5, %v565_v13, 16 }
 0x1eb   : > { %vm572_vm6 = vcmp.lt.s32.totalorder %v570_v19, %v571_v20  ;;  %v780_v23 = vsel %vm553_vm1, %v778_v21, 2147483647  ;;  %v781_v24 = vsel %vm553_vm1, %v779_v22, 2147483647  ;;  %v1249_v60 = vpack.c.bf16 %v903_v57, %v902_v56  ;;  %v910_v17 = vld [vmem:[%s1748_s2 + $0x50] sm:$0xff]  ;;  %v911_v18 = vld [vmem:[%s1748_s2 + $0x58] sm:$0xff] }
 0x1ec   : > { %v573_v25 = vsel %vm572_vm6, %v570_v19, %v571_v20  ;;  %vm782_vm7 = vcmp.lt.s32.totalorder %v780_v23, %v781_v24  ;;  %v1251_v61 = vpack.c.bf16 %v921_v59, %v920_v58  ;;  %v928_v19 = vld [vmem:[%s1748_s2 + $0xe0] sm:$0xff]  ;;  %v929_v20 = vld [vmem:[%s1748_s2 + $0xe8] sm:$0xff]  ;;  %v1265_v21 = vpack.c.bf16 %v911_v18, %v910_v17 }
 0x1ed   : > { %v574_v26 = vrot.slane %v573_v25, 4  ;;  %v783_v27 = vsel %vm782_vm7, %v780_v23, %v781_v24  ;;  %v1267_v22 = vpack.c.bf16 %v929_v20, %v928_v19 }
 0x1ee   : > { %v784_v28 = vrot.slane %v783_v27, 4 }
 0x1ef   : > { %vm575_vm8 = vcmp.lt.s32.totalorder %v573_v25, %v574_v26 }
 0x1f0   : > { %vm785_vm9 = vcmp.lt.s32.totalorder %v783_v27, %v784_v28  ;;  %v576_v29 = vsel %vm575_vm8, %v573_v25, %v574_v26 }
 0x1f1   : > { %v577_v30 = vrot.slane %v576_v29, 2  ;;  %v786_v31 = vsel %vm785_vm9, %v783_v27, %v784_v28 }
 0x1f2   : > { %v787_v32 = vrot.slane %v786_v31, 2 }
 0x1f3   : > { %vm578_vm10 = vcmp.lt.s32.totalorder %v576_v29, %v577_v30 }
 0x1f4   : > { %v579_v33 = vsel %vm578_vm10, %v576_v29, %v577_v30  ;;  %vm788_vm11 = vcmp.lt.s32.totalorder %v786_v31, %v787_v32 }
 0x1f5   : > { %v580_v34 = vrot.slane %v579_v33, 1  ;;  %v789_v35 = vsel %vm788_vm11, %v786_v31, %v787_v32 }
 0x1f6   : > { %v790_v36 = vrot.slane %v789_v35, 1 }
 0x1f7   : > { %vm581_vm12 = vcmp.lt.s32.totalorder %v579_v33, %v580_v34 }
 0x1f8   : > { %v582_v37 = vsel %vm581_vm12, %v579_v33, %v580_v34  ;;  %vm791_vm13 = vcmp.lt.s32.totalorder %v789_v35, %v790_v36 }
 0x1f9   : > { %vm583_vm14 = vcmp.eq.s32.totalorder %v564_v8, %v582_v37  ;;  %v792_v38 = vsel %vm791_vm13, %v789_v35, %v790_v36  ;;  %vm584_vm15 = vcmp.eq.s32.totalorder %v565_v13, %v582_v37 }
 0x1fa   : > { %v1567_v39 = vsel %vm583_vm14, 1.0, %v1389_v7  ;;  %vm793_vm2 = vcmp.eq.s32.totalorder %v564_v8, %v792_v38  ;;  %vm794_vm3 = vcmp.eq.s32.totalorder %v565_v13, %v792_v38  ;;  %v1577_v43 = vsel %vm584_vm15, 1.0, %v1389_v7  ;;  %v925_v8 = vld [vmem:[%s1748_s2 + $0xc8] sm:$0xff]  ;;  %v926_v13 = vld [vmem:[%s1748_s2 + $0xd0] sm:$0xff] }
 0x1fb   : > { %v589_v40 = vsel %vm553_vm1, %v1567_v39, 0.0  ;;  %v1572_v41 = vsel %vm793_vm2, 1.0, %v1389_v7  ;;  %v1580_v44 = vsel %vm794_vm3, 1.0, %v1389_v7  ;;  %v592_v45 = vsel %vm553_vm1, %v1577_v43, 0.0  ;;  %v900_v7 = vld [vmem:[%s1748_s2] sm:$0xff] }
 0x1fc   : > { %590 = vadd.xlane.f32.xlu0 %v589_v40  ;;  %v799_v42 = vsel %vm553_vm1, %v1572_v41, 0.0  ;;  %v802_v46 = vsel %vm553_vm1, %v1580_v44, 0.0  ;;  %v1245_v53 = vpack.c.bf16 %v901_v50, %v900_v7  ;;  %v1259_v10 = vpack.c.bf16 %v925_v8, %v924_v6  ;;  %v913_v40 = vld [vmem:[%s1748_s2 + $0x68] sm:$0xff] }
 0x1fd   : > { %800 = vadd.xlane.f32.xlu1 %v799_v42  ;;  %v1263_v16 = vpack.c.bf16 %v927_v14, %v926_v13 }
 0x1fe   : > { %1246 = vmatpush3.bf16.msra.mxu0 %v1245_v53 }
 0x1ff   : > { %1248 = vmatprep.subr.bf16.mxu0 %v1247_v55 }
 0x200   : > { %593 = vadd.xlane.f32.xlu0 %v592_v45  ;;  %v915_v45 = vld [vmem:[%s1748_s2 + $0x78] sm:$0xff] }
 0x201   : > { %803 = vadd.xlane.f32.xlu1 %v802_v46 }
 0x202   : > { %1250 = vmatpush3.bf16.msra.mxu0 %v1249_v60 }
 0x203   : > { %1252 = vmatprep.subr.bf16.mxu0 %v1251_v61 }
 0x206   : > { %1254 = vmatpush3.bf16.msra.mxu0 %v1253_v2 }
 0x207   : > { %1256 = vmatprep.subr.bf16.mxu0 %v1255_v3 }
 0x20a   : > { %1258 = vmatpush3.bf16.msra.mxu0 %v1257_v9 }
 0x20b   : > { %1260 = vmatprep.subr.bf16.mxu0 %v1259_v10 }
 0x20e   : > { %1262 = vmatpush3.bf16.msra.mxu0 %v1261_v15 }
 0x20f   : > { %1264 = vmatprep.subr.bf16.mxu0 %v1263_v16 }
 0x212   : > { %1266 = vmatpush3.bf16.msra.mxu0 %v1265_v21 }
 0x213   : > { %1268 = vmatprep.subr.bf16.mxu0 %v1267_v22 }
 0x289   : > { %v591_v23 = vpop.xlane.xlu0 %590 }
 0x28a   : > { %v595_v24 = vadd.f32 1.0, %v591_v23  ;;  %v801_v25 = vpop.xlane.xlu1 %800 }
 0x28b   : > { %v805_v26 = vadd.f32 1.0, %v801_v25 }
 0x28c   : > { %1317 = vrcp.f32 %v595_v24 }
 0x28d   : > { %v594_v27 = vpop.xlane.xlu0 %593  ;;  %1319 = vrcp.f32 %v805_v26 }
 0x28e   : > { %v596_v28 = vadd.f32 1.0, %v594_v27  ;;  %v804_v29 = vpop.xlane.xlu1 %803 }
 0x28f   : > { %v806_v30 = vadd.f32 1.0, %v804_v29 }
 0x290   : > { %1321 = vrcp.f32 %v596_v28 }
 0x291   : > { %1323 = vrcp.f32 %v806_v30 }
 0x296   : > { %v1318_v31 = vpop.eup %1317 }
 0x297   : > { %v601_v32 = vmul.f32 %v1318_v31, %v1567_v39  ;;  %v1320_v33 = vpop.eup %1319  ;;  %v912_v39 = vld [vmem:[%s1748_s2 + $0x60] sm:$0xff] }
 0x298   : > { %v811_v37 = vmul.f32 %v1320_v33, %v1572_v41  ;;  %v1269_v42 = vpack.c.bf16 %v913_v40, %v912_v39  ;;  %v931_v41 = vld [vmem:[%s1748_s2 + $0xf8] sm:$0xff] }
 0x299   : > { %1186 = vmatprep.mubr.msk.f32.mxu1 %vm553_vm1, %v601_v32 }
 0x29a   : > { %v1322_v34 = vpop.eup %1321  ;;  %1270 = vmatpush3.bf16.msra.mxu0 %v1269_v42 }
 0x29b   : > { %v602_v35 = vmul.f32 %v1322_v34, %v1577_v43  ;;  %v1324_v36 = vpop.eup %1323 }
 0x29c   : > { %v812_v38 = vmul.f32 %v1324_v36, %v1580_v44  ;;  %v914_v44 = vld [vmem:[%s1748_s2 + $0x70] sm:$0xff] }
 0x29d   : > { %1187 = vmatmul.mubr.msk.f32.vlgmr.msra.gmra.mrb[14].mxu1 %vm553_vm1, %v602_v35  ;;  %v1273_v46 = vpack.c.bf16 %v915_v45, %v914_v44 }
 0x29e   : > { %1242 = vmatpush3.bf16.msra.mxu1 %v1555_v54  ;;  %1200 = vmatprep.mubr.msk.f32.mxu1 %vm553_vm1, %v811_v37  ;;  %v930_v54 = vld [vmem:[%s1748_s2 + $0xf0] sm:$0xff] }
 0x29f   : > { %v1271_v43 = vpack.c.bf16 %v931_v41, %v930_v54 }
 0x2a1   : > { %1201 = vmatmul.mubr.msk.f32.vlgmr.msra.gmra.mrb[16].mxu1 %vm553_vm1, %v812_v38  ;;  %1272 = vmatprep.subr.bf16.mxu0 %v1271_v43 }
 0x2a2   : > { %1274 = vmatpush3.bf16.msra.mxu0 %v1273_v46 }
 0x370   : > { %v1188_v47 = vpop.f32.mrb[14].mxu1 }
 0x371   : > { %v675_v48 = vpop.f32.mrb[15].mxu1 }
 0x374   : > { %v1202_v7 = vpop.f32.mrb[16].mxu1 }
 0x375   : > { %v885_v49 = vpop.f32.mrb[17].mxu1 }
 0x376   : > { %1003 = vmatprep.mubr.f32.mxu0 %v885_v49 }
 0x377   : > { %1004 = vmatmul.mubr.f32.vlgmr.msra.gmra.mrb[2].mxu0 %v675_v48 }
 0x378   : > { %1008 = vmatprep.mubr.f32.mxu0 %v1202_v7 }
 0x37b   : > { %1009 = vmatmul.mubr.f32.gmra.mrb[4].mxu0 %v1188_v47 }
 0x44a   : > { %v1169_v50 = vpop.f32.mrb[2].mxu0 }
 0x44b   : > { %v1170_v52 = vpop.f32.mrb[3].mxu0 }
 0x44c   : > { %v1171_v53 = vadd.f32 %v1170_v52, %v1169_v50 }
 0x44e   : > { %v1006_v55 = vadd.f32 %v1171_v53, %v1113_v51  ;;  %v1172_v56 = vpop.f32.mrb[4].mxu0 }
 0x44f   : > { %v1173_v57 = vpop.f32.mrb[5].mxu0 }
 0x450   : > { %1014 = vst.msk [vmem:[%s190_s29] sm:$0xff] %vm222_vm0, %v1006_v55  ;;  %v1174_v58 = vadd.f32 %v1173_v57, %v1172_v56 }
 0x452   : > { %v1011_v59 = vadd.f32 %v1174_v58, %v1113_v51 }
 0x454   : > { %1015 = vst.msk [vmem:[%s190_s29 + $0x8] sm:$0xff] %vm222_vm0, %v1011_v59 }
 0x455   : > { %1338 = shalt.err (!%p1335_p3)
}
 0x456   : > { %s1339_s14 = scalar_lea.hbm %s1700_s9, 256  ;;  %s1343_s8 = scalar_lea.hbm %s1750_s4, 512 }
 0x457   : > { %p1340_p4 = scmp.ne.s32.totalorder %s1700_s9, %s1339_s14  ;;  %p1344_p9 = scmp.lt.u32.totalorder %s1700_s9, %s1750_s4 }
 0x458   : > { %p1345_p10 = scmp.lt.u32.totalorder %s1343_s8, %s1339_s14  ;;  %p1347_p12 = scmp.lt.u32.totalorder %s1339_s14, %s1700_s9 }
 0x459   : > { %p1341_p7 = pnand %p1340_p4, %p1456_p5 }
 0x45a   : > { %p1346_p11 = por %p1345_p10, %p1344_p9 }
 0x45b   : > { %p1342_p8 = pneg %p1341_p7 }
 0x45c   : > { %p1348_p13 = por %p1347_p12, %p1346_p11 }
 0x45e   : > { %p1349_p0 = pnand %p1348_p13, %p1342_p8 }
 0x460   : > { %1352 = shalt.err (!%p1349_p0)
}
 0x461   : > { %s1391_s28 = smov 128   ;;  %s1392_s29 = smov 8  }
 0x462   : > { %1275 = dma.vmem_to_hbm [thread:$0]  (%p1456_p5), %s1702_s30, 256, %s1700_s9, %s1705_s10, %s1391_s28, %s1391_s28, %s1392_s29  }
 0x463 PF: > { %p1281_p1 = scmp.ge.s32.totalorder %s1387_s18, 2  ;;  %s1045_s5 = sand.u32 1, %s1375_s15  }
 0x464   : > { %s1046_s6 = scalar_lea.sflag [#allocation5], %s1045_s5 }
 0x465   : > { %p1278_p2 = pnand %p1281_p1, %p1460_p6 }
 0x467   : > { %1370 = dma.done.wait (!%p1278_p2), %s1046_s6, 256  }
 0x468   : > { %1372 = vsyncadd (!%p1278_p2), %s1046_s6, 4294967040  ;;  %p14_p3 = scmp.ge.s32.totalorder %s1443_s21, 4   ;;  %s1753_s15 = smov %s1379_s16 }
 0x469   : > { %s1754_s16 = smov %s1383_s17  ;;  %s1755_s17 = smov %s1454_s24 }
 0x46a   : > { %s1756_s18 = smov %s1443_s21  ;;  %16 = sbr.rel (!%p14_p3) target bundleno = 3 (0x3), region = 71 }
 0x471   :  { %1051 = vsyncpa [#allocation5], 1 }
 0x472   :  { %1053 = vsyncpa [#allocation5 + $0x1], 1 }

</bundles_post_ra>
